<compile_context>
chip_gen: v7x
topology: tpu7x:2x2x1
jax: 0.10.0
libtpu: 0.0.40
codegen_flags: <defaults>
</compile_context>

<pallas_src>
import functools

import jax
import jax.numpy as jnp
from jax import lax
from jax.experimental import pallas as pl
from jax.experimental.pallas import tpu as pltpu

_MIB = 1024 * 1024


def _round_up(x, m):
    return ((x + m - 1) // m) * m


def _tpu_generation():
    """Best-effort TPU generation sniff from device_kind; None if unknown."""
    try:
        kind = jax.devices()[0].device_kind.lower()
    except Exception:
        return None
    if "v5 lite" in kind or "v5lite" in kind or "v5e" in kind:
        return "v5e"
    if "v6" in kind:
        return "v6e"
    if "v7" in kind or "tpu7" in kind or "7x" in kind:
        return "v7x"
    return None


def _target_and_vmem_limit(gen, itemsize):
    """Per-generation padded-block byte target and explicit scoped-VMEM limit."""
    if gen == "v7x":
        # 64 MiB physical VMEM, 3.2 TB/s HBM: bigger blocks, explicit 48 MiB cap.
        return 10 * _MIB, 48 * _MIB
    if gen == "v6e":
        # Single TC, 128 MiB physical VMEM: go big, raise the 32 MiB scoped default.
        return 8 * _MIB, 64 * _MIB
    if gen == "v5e":
        # 16 MiB scoped default; bf16 tiles widen to f32 in-kernel (2x live bytes).
        return (2 * _MIB if itemsize < 4 else 4 * _MIB), 32 * _MIB
    # Unknown chip: conservative block, modest explicit limit.
    return 4 * _MIB, 32 * _MIB


def _choose_tiling(n, c, hw, itemsize, target_bytes):
    """Pick (bn, tc, tk) so the PADDED footprint of one (bn, tc, tk) input block
    stays under target_bytes.

    Padding model: last dim (lanes) rounds up to 128; second-to-last dim
    (sublanes) rounds up to 8 (32-bit), 16 (16-bit) or 32 (8-bit) elements.
    """
    sub = 8 * max(1, 4 // itemsize)

    def padded(bn, tc, tk):
        return bn * _round_up(tc, sub) * _round_up(tk, 128) * itemsize

    # 1) A whole (C, HW) image fits: batch BN images per grid step.
    per_image = padded(1, c, hw)
    if per_image <= target_bytes:
        bn = max(1, target_bytes // per_image)
        bn = min(bn, n)
        return bn, c, hw

    # 2) Single image too big: keep full C, split HW into 128-aligned chunks
    #    and accumulate across a reduction grid axis.
    if hw > 128 and padded(1, c, 128) <= target_bytes:
        chunks = max(1, target_bytes // padded(1, c, 128))
        tk = chunks * 128
        if tk >= hw:
            tk = hw
        return 1, c, tk

    # 3) C alone is too large for one block: split C into 128-multiples
    #    (keeps the (bn, tc) output block lane-dense), and split HW too if a
    #    single (128, HW) slab still exceeds the budget.
    tk = hw
    if hw > 128 and padded(1, 128, hw) > target_bytes:
        tk = max(128, (target_bytes // padded(1, 128, 128)) * 128)
        if tk >= hw:
            tk = hw
    tc = max(128, (target_bytes // padded(1, 128, tk)) * 128)
    if tc >= c:
        tc = c
    return 1, tc, tk


def _gap_sum_kernel(x_ref, o_ref, *, inv_hw):
    # Whole HW extent in one block: direct sum * (1/HW), no scratch, no pl.when.
    x = x_ref[...].astype(jnp.float32)
    o_ref[...] = (jnp.sum(x, axis=-1) * jnp.float32(inv_hw)).astype(o_ref.dtype)


def _gap_acc_kernel(x_ref, o_ref, acc_ref, *, hw, tk, inv_hw, needs_mask):
    # x_ref: (BN, TC, TK) tile; o_ref: (BN, TC); acc_ref: (BN, TC) f32 scratch.
    k = pl.program_id(2)
    last = pl.num_programs(2) - 1

    @pl.when(k == 0)
    def _():
        acc_ref[...] = jnp.zeros_like(acc_ref)

    if needs_mask:
        # Fast path: every chunk except the last is fully in-bounds.
        @pl.when(k != last)
        def _():
            acc_ref[...] += jnp.sum(x_ref[...].astype(jnp.float32), axis=-1)

        # Only the last chunk pays the lane mask (partial HW tail).
        @pl.when(k == last)
        def _():
            x = x_ref[...].astype(jnp.float32)
            lane = lax.broadcasted_iota(jnp.int32, (1, 1, tk), 2)
            x = jnp.where(lane < (hw - k * tk), x, 0.0)
            acc_ref[...] += jnp.sum(x, axis=-1)
    else:
        acc_ref[...] += jnp.sum(x_ref[...].astype(jnp.float32), axis=-1)

    @pl.when(k == last)
    def _():
        o_ref[...] = (acc_ref[...] * jnp.float32(inv_hw)).astype(o_ref.dtype)


def gap(x):
    """x: (N, C, H, W) -> (N, C), mean over H and W (AdaptiveAvgPool2d(1) + view)."""
    n, c, h, w = x.shape
    hw = h * w
    x_flat = x.reshape(n, c, hw)  # free reshape; HW lands on the lane axis
    itemsize = x.dtype.itemsize

    gen = _tpu_generation()
    target_bytes, vmem_limit = _target_and_vmem_limit(gen, itemsize)
    bn, tc, tk = _choose_tiling(n, c, hw, itemsize, target_bytes)

    # On v7x (2 TCs/chip) keep an even number of N steps so CORE_PARALLEL can
    # split them across both cores; single-TC chips keep the maximal bn.
    if gen == "v7x" and n >= 2 and bn > 1:
        g = pl.cdiv(n, bn)
        if g % 2:
            g += 1
        bn = pl.cdiv(n, g)

    grid_n = pl.cdiv(n, bn)
    grid_c = pl.cdiv(c, tc)
    grid_k = pl.cdiv(hw, tk)
    needs_mask = (hw % tk) != 0
    inv_hw = 1.0 / hw

    if grid_k == 1:
        kernel = functools.partial(_gap_sum_kernel, inv_hw=inv_hw)
        scratch_shapes = []
    else:
        kernel = functools.partial(_gap_acc_kernel, hw=hw, tk=tk,
                                   inv_hw=inv_hw, needs_mask=needs_mask)
        scratch_shapes = [pltpu.VMEM((bn, tc), jnp.float32)]

    cost = pl.CostEstimate(
        flops=n * c * hw,
        transcendentals=0,
        bytes_accessed=n * c * hw * itemsize + n * c * itemsize,
    )

    def _build(n_sem, c_sem, k_sem):
        return pl.pallas_call(
            kernel,
            out_shape=jax.ShapeDtypeStruct((n, c), x.dtype),
            grid_spec=pltpu.PrefetchScalarGridSpec(
                num_scalar_prefetch=0,
                grid=(grid_n, grid_c, grid_k),
                in_specs=[pl.BlockSpec((bn, tc, tk), lambda i, j, k: (i, j, k))],
                out_specs=pl.BlockSpec((bn, tc), lambda i, j, k: (i, j)),
                scratch_shapes=scratch_shapes,
            ),
            compiler_params=pltpu.CompilerParams(
                dimension_semantics=(n_sem, c_sem, k_sem),
                vmem_limit_bytes=vmem_limit,
            ),
            cost_estimate=cost,
        )

    if gen == "v7x" and grid_n >= 2 and grid_n % 2 == 0:
        # Explicit two-core sharding of the N axis on v7x.
        try:
            return _build(pltpu.CORE_PARALLEL, pltpu.PARALLEL, pltpu.ARBITRARY)(x_flat)
        except Exception:
            pass  # fall back to plain semantics if core-parallel lowering rejects
    return _build("parallel", "parallel", "arbitrary")(x_flat)


if __name__ == "__main__":
    key = jax.random.PRNGKey(0)
    # NCHW, small shapes consistent with the module
    x = jax.random.normal(key, (2, 4, 16, 16), dtype=jnp.float32)

    out = gap(x)
    out = jax.block_until_ready(out)

    # reference check against plain JAX GAP
    ref = jnp.mean(x, axis=(2, 3))
    assert out.shape == (2, 4)
    assert jnp.allclose(out, ref, atol=1e-5, rtol=1e-5)

    print("KERNEL_OK")
</pallas_src>

<mosaic_0001>
module attributes {stable_mosaic.version = 11 : i64} {
  func.func @_gap_sum_kernel(%arg0: i32, %arg1: i32, %arg2: i32, %arg3: memref<2x4x256xf32, #tpu.memory_space<vmem>>, %arg4: memref<2x4xf32, #tpu.memory_space<vmem>>) attributes {dimension_semantics = [#tpu.dimension_semantics<parallel>, #tpu.dimension_semantics<parallel>, #tpu.dimension_semantics<arbitrary>], iteration_bounds = array<i64: 1, 1, 1>, scalar_prefetch = 0 : i64, scratch_operands = 0 : i64, tpu.core_type = #tpu.core_type<tc>, window_params = [{transform_indices = @transform_0, window_bounds = array<i64: 2, 4, 256>}, {transform_indices = @transform_1, window_bounds = array<i64: 2, 4>}]} {
    %c0 = arith.constant 0 : index
    %c0_0 = arith.constant 0 : index
    %c0_1 = arith.constant 0 : index
    %0 = vector.load %arg3[%c0, %c0_0, %c0_1] : memref<2x4x256xf32, #tpu.memory_space<vmem>>, vector<2x4x256xf32>
    %cst = arith.constant dense<0.000000e+00> : vector<2x4xf32>
    %1 = vector.multi_reduction <add>, %0, %cst [2] : vector<2x4x256xf32> to vector<2x4xf32>
    %cst_2 = arith.constant 3.906250e-03 : f32
    %2 = vector.broadcast %cst_2 : f32 to vector<2x4xf32>
    %3 = arith.mulf %1, %2 : vector<2x4xf32>
    %c0_3 = arith.constant 0 : index
    %c0_4 = arith.constant 0 : index
    %4 = vector.load %arg4[%c0_3, %c0_4] : memref<2x4xf32, #tpu.memory_space<vmem>>, vector<2x4xf32>
    tpu.vector_store %arg4[%c0_3, %c0_4], %3 {strides = array<i32>} : memref<2x4xf32, #tpu.memory_space<vmem>>, vector<2x4xf32>,
    return
  }
  func.func @transform_0(%arg0: i32, %arg1: i32, %arg2: i32) -> (i32, i32, i32) {
    %c0_i32 = arith.constant 0 : i32
    return %arg0, %arg1, %arg2 : i32, i32, i32
  }
  func.func @transform_1(%arg0: i32, %arg1: i32, %arg2: i32) -> (i32, i32) {
    %c0_i32 = arith.constant 0 : i32
    return %arg0, %arg1 : i32, i32
  }
}

</mosaic_0001>

<bundles_post_ra>
// kernel: tpu_custom_call.1
= control target key start
LH: loop header
LB: loop body
LE: loop exit
PB: predicated region body
PF: predicated region fallthrough
CT: control target
= control target key end

     0   :  { %6 = vsyncpa [#allocation3], 0  ;;  %s168_s0 = inlined_call_operand.hbm [shape: f32[2,4,256], index: 0, kind: input, shape index: {}]   ;;  %s169_s1 = inlined_call_operand.hbm [shape: f32[2,4], index: 1, kind: output, shape index: {}]  }
   0x1   :  { %7 = vsyncpa [#allocation4], 0  ;;  %s130_s6 = smov [#allocation2]   ;;  %s82_s10 = scalar_lea.hbm %s168_s0, 256 }
   0x2   :  { %s13_s7 = sshll.u32 %s130_s6, 4  ;;  %p83_p0 = scmp.ne.s32.totalorder %s168_s0, %s82_s10  ;;  %s14_s7 = int_to_ptr.vmem [resolvable:$true] %s13_s7 }
   0x3   :  { %p86_p1 = scmp.lt.u32.totalorder %s82_s10, %s168_s0 }
   0x5   :  { %p88_p2 = pnand %p86_p1, %p83_p0 }
   0x7   :  { %91 = shalt.err (!%p88_p2)
}
   0x8   :  { %s92_s15 = scalar_lea.vmem %s14_s7, 256  ;;  %p97_p4 = scmp.lt.s32.totalorder %s14_s7, %s14_s7 }
   0x9   :  { %p93_p3 = scmp.ne.s32.totalorder %s14_s7, %s92_s15  ;;  %p98_p5 = scmp.lt.s32.totalorder %s92_s15, %s92_s15 }
   0xb   :  { %p99_p6 = por %p98_p5, %p97_p4 }
   0xd   :  { %p100_p7 = pnand %p99_p6, %p93_p3 }
   0xf   :  { %103 = shalt.err (!%p100_p7)
}
  0x10   :  { %s131_s16 = smov 128   ;;  %s132_s17 = smov 8  }
  0x11   :  { %19 = dma.hbm_to_vmem [thread:$0]  %s168_s0, 256, %s14_s7, [#allocation3], %s131_s16, %s131_s16, %s132_s17  }
  0x12   :  { %126 = dma.done.wait [#allocation3], 256  }
  0x13   :  { %127 = vsyncadd [#allocation3], 4294967040  ;;  %vm31_vm0 = vcmask 1043456   ;;  %v23_v0 = vld [vmem:[#allocation2] sm:$0xff]  ;;  %v24_v1 = vld [vmem:[#allocation2 + $0x8] sm:$0xff]  ;;  %v46_v10 = vlaneseq  ;;  %s133_s0 = smov [#allocation5]  }
  0x14   :  { %v27_v2 = vcombine.high %v23_v0, %v23_v0  ;;  %v32_v3 = vsel %vm31_vm0, %v23_v0, 0.0  ;;  %v28_v4 = vcombine.high %v24_v1, %v24_v1  ;;  %v37_v6 = vsel %vm31_vm0, %v24_v1, 0.0  ;;  %s67_s20 = sshll.u32 %s133_s0, 4  ;;  %s68_s20 = int_to_ptr.vmem [resolvable:$true] %s67_s20 }
  0x15   :  { %v47_v11 = vand.u32 127, %v46_v10  ;;  %v49_v12 = vshrl.u32 %v46_v10, 7  ;;  %vm56_vm1 = vcmask 1041409   ;;  %vm59_vm2 = vcmask 25600   ;;  %s104_s21 = scalar_lea.vmem %s68_s20, 32  ;;  %p109_p9 = scmp.lt.s32.totalorder %s68_s20, %s68_s20 }
  0x16   :  { %v33_v5 = vsel %vm31_vm0, %v27_v2, 0.0  ;;  %v38_v7 = vsel %vm31_vm0, %v28_v4, 0.0  ;;  %p105_p8 = scmp.ne.s32.totalorder %s68_s20, %s104_s21  ;;  %p110_p10 = scmp.lt.s32.totalorder %s104_s21, %s104_s21 }
  0x17   :  { %v34_v8 = vadd.f32 %v33_v5, %v32_v3  ;;  %v39_v9 = vadd.f32 %v38_v7, %v37_v6  ;;  %v50_v14 = vsub.s32 %v47_v11, %v49_v12 }
  0x18   :  { %p111_p11 = por %p110_p10, %p109_p9 }
  0x19   :  { %35 = vadd.xlane.f32.xlu0 %v34_v8 }
  0x1a   :  { %p112_p12 = pnand %p111_p11, %p105_p8 }
  0x1d   :  { %40 = vadd.xlane.f32.xlu0 %v39_v9 }
  0xa6   :  { %v36_v13 = vpop.xlane.xlu0 %35 }
  0xa7   :  { %v42_v15 = vmul.f32 0.00390625, %v36_v13 }
  0xa9   :  { %v51_v18 = vrot.slane %v42_v15, %v50_v14 }
  0xaa   :  { %v41_v16 = vpop.xlane.xlu0 %40 }
  0xab   :  { %v43_v17 = vmul.f32 0.00390625, %v41_v16 }
  0xad   :  { %v55_v19 = vrot.slane %v43_v17, %v50_v14 }
  0xaf   :  { %v57_v20 = vsel %vm56_vm1, %v55_v19, %v51_v18 }
  0xb0   :  { %60 = vst.msk [vmem:[#allocation5] sm:$0x3] %vm59_vm2, %v57_v20 }
  0xb1   :  { %115 = shalt.err (!%p112_p12)
}
  0xb2   :  { %s116_s24 = scalar_lea.hbm %s169_s1, 32 }
  0xb3   :  { %p117_p13 = scmp.ne.s32.totalorder %s169_s1, %s116_s24  ;;  %p120_p0 = scmp.lt.u32.totalorder %s116_s24, %s169_s1 }
  0xb5   :  { %p122_p1 = pnand %p120_p0, %p117_p13 }
  0xb7   :  { %125 = shalt.err (!%p122_p1)
}
  0xb8   :  { %70 = dma.vmem_to_hbm [thread:$0]  %s68_s20, 32, %s169_s1, [#allocation4]  }
  0xb9   :  { %128 = dma.done.wait [#allocation4], 32  }
  0xba   :  { %129 = vsyncadd [#allocation4], 4294967264 }
  0xbb   :  { %74 = vsyncpa [#allocation3], 1 }
  0xbc   :  { %75 = vsyncpa [#allocation4], 1 }

</bundles_post_ra>
